<compile_context>
chip_gen: v6e
topology: v6e:2x2x1
jax: 0.10.0
libtpu: 0.0.40
codegen_flags: <defaults>
</compile_context>

<pallas_src>
import jax
import jax.numpy as jnp
from jax.experimental import pallas as pl
from jax.experimental.pallas import tpu as pltpu


def mlp_softmax_kernel(x_ref, w1_ref, b1_ref, w2_ref, b2_ref, out_ref):
    # fc1: bf16 x bf16 on the MXU, accumulate in f32
    h = jnp.dot(x_ref[...], w1_ref[...], preferred_element_type=jnp.float32)
    h = jnp.maximum(h + b1_ref[...], 0.0)            # bias + ReLU in f32
    # fc2: bf16 x bf16 on the MXU, accumulate in f32
    logits = jnp.dot(h.astype(jnp.bfloat16), w2_ref[...],
                     preferred_element_type=jnp.float32)
    logits = logits + b2_ref[...]                     # padded lanes carry -1e30 bias
    # numerically stable softmax over dim=1; padded columns contribute exp(...)==0
    m = jnp.max(logits, axis=1, keepdims=True)
    e = jnp.exp(logits - m)
    denom = jnp.sum(e, axis=1, keepdims=True)
    out_ref[...] = (e * pl.reciprocal(denom, approx=True)).astype(out_ref.dtype)


def neural_network_forward(x, w1, b1, w2, b2, *, tm=256):
    """x: (B, input_size) f32. Returns (B, output_size) f32 softmax probabilities."""
    B, in_size = x.shape
    hidden = w1.shape[1]
    out_size = w2.shape[1]

    # ---- lane-dense output: pad feature dim to a multiple of 128 lanes ------
    out_pad = ((out_size + 127) // 128) * 128
    neg = jnp.float32(-1e30)
    w2p = jnp.zeros((hidden, out_pad), jnp.float32).at[:, :out_size].set(
        w2.astype(jnp.float32))
    b2p = jnp.full((1, out_pad), neg, dtype=jnp.float32).at[:, :out_size].set(
        b2.reshape(1, out_size).astype(jnp.float32))

    # ---- bf16 MXU operands; biases stay f32 ----------------------------------
    x_bf = x.astype(jnp.bfloat16)
    w1_bf = w1.astype(jnp.bfloat16)
    w2_bf = w2p.astype(jnp.bfloat16)
    b1_f = b1.reshape(1, hidden).astype(jnp.float32)

    # ---- batch tiling: pad B, 1-D grid over batch -----------------------------
    if B >= tm:
        b_pad = pl.cdiv(B, tm) * tm
    else:
        b_pad = ((B + 15) // 16) * 16    # bf16 packs 16 sublanes/vreg
        tm = b_pad
    if b_pad != B:
        x_bf = jnp.pad(x_bf, ((0, b_pad - B), (0, 0)))

    grid = (b_pad // tm,)
    vmem = pltpu.MemorySpace.VMEM

    out = pl.pallas_call(
        mlp_softmax_kernel,
        out_shape=jax.ShapeDtypeStruct((b_pad, out_pad), jnp.float32),
        grid=grid,
        in_specs=[
            pl.BlockSpec((tm, in_size), lambda i: (i, 0), memory_space=vmem),
            pl.BlockSpec((in_size, hidden), lambda i: (0, 0), memory_space=vmem),
            pl.BlockSpec((1, hidden), lambda i: (0, 0), memory_space=vmem),
            pl.BlockSpec((hidden, out_pad), lambda i: (0, 0), memory_space=vmem),
            pl.BlockSpec((1, out_pad), lambda i: (0, 0), memory_space=vmem),
        ],
        out_specs=pl.BlockSpec((tm, out_pad), lambda i: (i, 0), memory_space=vmem),
        compiler_params=pltpu.CompilerParams(
            dimension_semantics=("parallel",),      # shard batch tiles across TCs (v7x)
            vmem_limit_bytes=32 * 1024 * 1024,      # safe on v7x's 64 MiB VMEM
        ),
    )(x_bf, w1_bf, b1_f, w2_bf, b2p)

    return out[:B, :out_size]


def init_params(key, input_size, hidden_size, output_size):
    """Deterministic init mimicking nn.Linear's uniform(-1/sqrt(fan_in), 1/sqrt(fan_in))."""
    k1, k2, k3, k4 = jax.random.split(key, 4)
    bound1 = 1.0 / jnp.sqrt(input_size)
    bound2 = 1.0 / jnp.sqrt(hidden_size)
    # stored as (in_features, out_features): transpose of PyTorch's (out, in) layout
    w1 = jax.random.uniform(k1, (input_size, hidden_size), jnp.float32, -bound1, bound1)
    b1 = jax.random.uniform(k2, (1, hidden_size), jnp.float32, -bound1, bound1)
    w2 = jax.random.uniform(k3, (hidden_size, output_size), jnp.float32, -bound2, bound2)
    b2 = jax.random.uniform(k4, (1, output_size), jnp.float32, -bound2, bound2)
    return w1, b1, w2, b2


if __name__ == "__main__":
    batch = 512          # big enough to exercise the batch grid (2 tiles of 256)
    input_size = 32
    hidden_size = 64
    output_size = 16

    key = jax.random.PRNGKey(0)
    kx, kp = jax.random.split(key)
    x = jax.random.normal(kx, (batch, input_size), dtype=jnp.float32)
    w1, b1, w2, b2 = init_params(kp, input_size, hidden_size, output_size)

    out = neural_network_forward(x, w1, b1, w2, b2)
    out = jax.block_until_ready(out)

    # Reference in plain JAX f32 (same math as the PyTorch forward).
    # Tolerance is loosened to account for bf16 MXU operands + approx reciprocal.
    ref = jax.nn.softmax(jnp.maximum(x @ w1 + b1, 0.0) @ w2 + b2, axis=1)
    assert out.shape == (batch, output_size), "wrong output shape"
    assert bool(jnp.all(jnp.isfinite(out))), "non-finite values in output"
    assert jnp.allclose(out, ref, atol=2e-2), "mismatch vs f32 reference"
    assert jnp.allclose(jnp.sum(out, axis=1), 1.0, atol=1e-3), "rows must sum to 1"

    print("KERNEL_OK")
</pallas_src>

<mosaic_0001>
module attributes {stable_mosaic.version = 11 : i64} {
  func.func @mlp_softmax_kernel(%arg0: i32, %arg1: memref<256x32xbf16, #tpu.memory_space<vmem>>, %arg2: memref<32x64xbf16, #tpu.memory_space<vmem>>, %arg3: memref<1x64xf32, #tpu.memory_space<vmem>>, %arg4: memref<64x128xbf16, #tpu.memory_space<vmem>>, %arg5: memref<1x128xf32, #tpu.memory_space<vmem>>, %arg6: memref<256x128xf32, #tpu.memory_space<vmem>>) attributes {dimension_semantics = [#tpu.dimension_semantics<parallel>], iteration_bounds = array<i64: 2>, scalar_prefetch = 0 : i64, scratch_operands = 0 : i64, tpu.core_type = #tpu.core_type<tc>, window_params = [{transform_indices = @transform_0, window_bounds = array<i64: 256, 32>}, {pipeline_mode = #tpu.pipeline_mode<synchronous>, transform_indices = @transform_1, window_bounds = array<i64: 32, 64>}, {pipeline_mode = #tpu.pipeline_mode<synchronous>, transform_indices = @transform_2, window_bounds = array<i64: 1, 64>}, {pipeline_mode = #tpu.pipeline_mode<synchronous>, transform_indices = @transform_3, window_bounds = array<i64: 64, 128>}, {pipeline_mode = #tpu.pipeline_mode<synchronous>, transform_indices = @transform_4, window_bounds = array<i64: 1, 128>}, {transform_indices = @transform_5, window_bounds = array<i64: 256, 128>}]} {
    %c0 = arith.constant 0 : index
    %c0_0 = arith.constant 0 : index
    %0 = vector.load %arg1[%c0, %c0_0] : memref<256x32xbf16, #tpu.memory_space<vmem>>, vector<256x32xbf16>
    %c0_1 = arith.constant 0 : index
    %c0_2 = arith.constant 0 : index
    %1 = vector.load %arg2[%c0_1, %c0_2] : memref<32x64xbf16, #tpu.memory_space<vmem>>, vector<32x64xbf16>
    %cst = arith.constant dense<0.000000e+00> : vector<256x64xf32>
    %2 = tpu.matmul %0, %1, %cst {dimension_numbers = #tpu.dot_dimension_numbers<[1], [0], [0], [1], [0, 0, 1, 1], [], []>} : vector<256x32xbf16>, vector<32x64xbf16>, vector<256x64xf32> -> vector<256x64xf32>
    %c0_3 = arith.constant 0 : index
    %c0_4 = arith.constant 0 : index
    %3 = vector.load %arg3[%c0_3, %c0_4] : memref<1x64xf32, #tpu.memory_space<vmem>>, vector<1x64xf32>
    %4 = vector.broadcast %3 : vector<1x64xf32> to vector<256x64xf32>
    %5 = arith.addf %2, %4 : vector<256x64xf32>
    %cst_5 = arith.constant 0.000000e+00 : f32
    %6 = vector.broadcast %cst_5 : f32 to vector<256x64xf32>
    %7 = arith.maximumf %5, %6 : vector<256x64xf32>
    %8 = arith.truncf %7 : vector<256x64xf32> to vector<256x64xbf16>
    %c0_6 = arith.constant 0 : index
    %c0_7 = arith.constant 0 : index
    %9 = vector.load %arg4[%c0_6, %c0_7] : memref<64x128xbf16, #tpu.memory_space<vmem>>, vector<64x128xbf16>
    %cst_8 = arith.constant dense<0.000000e+00> : vector<256x128xf32>
    %10 = tpu.matmul %8, %9, %cst_8 {dimension_numbers = #tpu.dot_dimension_numbers<[1], [0], [0], [1], [0, 0, 1, 1], [], []>} : vector<256x64xbf16>, vector<64x128xbf16>, vector<256x128xf32> -> vector<256x128xf32>
    %c0_9 = arith.constant 0 : index
    %c0_10 = arith.constant 0 : index
    %11 = vector.load %arg5[%c0_9, %c0_10] : memref<1x128xf32, #tpu.memory_space<vmem>>, vector<1x128xf32>
    %12 = vector.broadcast %11 : vector<1x128xf32> to vector<256x128xf32>
    %13 = arith.addf %10, %12 : vector<256x128xf32>
    %cst_11 = arith.constant dense<0xFF800000> : vector<256xf32>
    %14 = vector.multi_reduction <maximumf>, %13, %cst_11 [1] : vector<256x128xf32> to vector<256xf32>
    %15 = vector.shape_cast %14 : vector<256xf32> to vector<256x1xf32>
    %16 = vector.broadcast %15 : vector<256x1xf32> to vector<256x128xf32>
    %17 = arith.subf %13, %16 : vector<256x128xf32>
    %18 = math.exp %17 : vector<256x128xf32>
    %cst_12 = arith.constant dense<0.000000e+00> : vector<256xf32>
    %19 = vector.multi_reduction <add>, %18, %cst_12 [1] : vector<256x128xf32> to vector<256xf32>
    %20 = vector.shape_cast %19 : vector<256xf32> to vector<256x1xf32>
    %21 = tpu.reciprocal %20 {approx = true} : vector<256x1xf32> -> vector<256x1xf32>
    %22 = vector.broadcast %21 : vector<256x1xf32> to vector<256x128xf32>
    %23 = arith.mulf %18, %22 : vector<256x128xf32>
    %c0_13 = arith.constant 0 : index
    %c0_14 = arith.constant 0 : index
    %24 = vector.load %arg6[%c0_13, %c0_14] : memref<256x128xf32, #tpu.memory_space<vmem>>, vector<256x128xf32>
    tpu.vector_store %arg6[%c0_13, %c0_14], %23 {strides = array<i32>} : memref<256x128xf32, #tpu.memory_space<vmem>>, vector<256x128xf32>,
    return
  }
  func.func @transform_0(%arg0: i32) -> (i32, i32) {
    %c0_i32 = arith.constant 0 : i32
    %c0_i32_0 = arith.constant 0 : i32
    return %arg0, %c0_i32 : i32, i32
  }
  func.func @transform_1(%arg0: i32) -> (i32, i32) {
    %c0_i32 = arith.constant 0 : i32
    %c0_i32_0 = arith.constant 0 : i32
    %c0_i32_1 = arith.constant 0 : i32
    return %c0_i32, %c0_i32_0 : i32, i32
  }
  func.func @transform_2(%arg0: i32) -> (i32, i32) {
    %c0_i32 = arith.constant 0 : i32
    %c0_i32_0 = arith.constant 0 : i32
    %c0_i32_1 = arith.constant 0 : i32
    return %c0_i32, %c0_i32_0 : i32, i32
  }
  func.func @transform_3(%arg0: i32) -> (i32, i32) {
    %c0_i32 = arith.constant 0 : i32
    %c0_i32_0 = arith.constant 0 : i32
    %c0_i32_1 = arith.constant 0 : i32
    return %c0_i32, %c0_i32_0 : i32, i32
  }
  func.func @transform_4(%arg0: i32) -> (i32, i32) {
    %c0_i32 = arith.constant 0 : i32
    %c0_i32_0 = arith.constant 0 : i32
    %c0_i32_1 = arith.constant 0 : i32
    return %c0_i32, %c0_i32_0 : i32, i32
  }
  func.func @transform_5(%arg0: i32) -> (i32, i32) {
    %c0_i32 = arith.constant 0 : i32
    %c0_i32_0 = arith.constant 0 : i32
    return %arg0, %c0_i32 : i32, i32
  }
}

</mosaic_0001>

<bundles_post_ra>
// kernel: tpu_custom_call.1
= control target key start
LH: loop header
LB: loop body
LE: loop exit
PB: predicated region body
PF: predicated region fallthrough
CT: control target
= control target key end

     0   :  { %10 = vsyncpa [#allocation3], 0  ;;  %s2272_s0 = inlined_call_operand.vmem [shape: bf16[512,32], index: 0, kind: input, shape index: {}]   ;;  %s2273_s1 = inlined_call_operand.vmem [shape: bf16[32,64], index: 1, kind: input, shape index: {}]   ;;  %s2274_s2 = inlined_call_operand.vmem [shape: f32[1,64], index: 2, kind: input, shape index: {}]   ;;  %s2275_s3 = inlined_call_operand.vmem [shape: bf16[64,128], index: 3, kind: input, shape index: {}]   ;;  %s2276_s4 = inlined_call_operand.vmem [shape: f32[1,128], index: 4, kind: input, shape index: {}]   ;;  %s2277_s5 = inlined_call_operand.hbm [shape: f32[512,128], index: 5, kind: output, shape index: {}]  }
   0x1   :  { %12 = vsyncpa [#allocation3 + $0x1], 0  ;;  %s1734_s18 = smov 0   ;;  %s1736_s19 = smov 0  }
   0x2   :  { %s1738_s20 = smov 0   ;;  %s1740_s21 = smov 0  }
   0x3 LB: > { %s1755_s22 = sadd.s32 4294967295, %s1699_s21   ;;  %s1265_s23 = sadd.s32 4294967294, %s1699_s21   ;;  %s1699_s21 = sphi %s1740_s21, %s2283_s21   ;;  %s1695_s20 = sphi %s1738_s20, %s2282_s20   ;;  %s1691_s19 = sphi %s1736_s19, %s2281_s19   ;;  %s1687_s18 = sphi %s1734_s18, %s2280_s18  }
   0x4   : > { %s1759_s24 = sadd.s32 1, %s1699_s21   ;;  %s135_s25 = sadd.s32 1, %s1695_s20 }
   0x5   : > { %s132_s26 = ssub.s32 %s1699_s21, %s1759_s24  ;;  %p145_p0 = scmp.ne.s32.totalorder %s1695_s20, %s1691_s19 }
   0x6   : > { %p133_p1 = scmp.eq.s32.totalorder %s132_s26, 0  ;;  %p146_p2 = scmp.eq.s32.totalorder %s1755_s22, 1 }
   0x7   : > { %p151_p3 = scmp.ne.s32.totalorder %s1691_s19, %s1687_s18  ;;  %p152_p4 = scmp.eq.s32.totalorder %s1265_s23, 1 }
   0x8   : > { %s1770_s27 = scalar_select %p133_p1, %s1695_s20, %s135_s25  }
   0x9   : > { %p1772_p5 = por %p146_p2, %p145_p0  ;;  %p1776_p6 = por %p152_p4, %p151_p3 }
   0xa   : > { %p1268_p7 = scmp.ge.s32.totalorder %s1699_s21, 1  ;;  %p191_p8 = scmp.lt.s32.totalorder %s1699_s21, 3 }
   0xc   : > { %p192_p9 = pnand %p1268_p7, %p191_p8 }
   0xd   : > { %s1270_s7 = sshll.u32 (!%p192_p9), %s1755_s22, 5  ;;  %s216_s10 = sand.u32 (!%p192_p9), 1, %s1691_s19  }
   0xe   : > { %195 = sbr.rel (%p192_p9) target bundleno = 819 (0x333), region = 40  ;;  %p220_p10 = scmp.lt.s32.totalorder (!%p192_p9), %s1270_s7, 63 }
   0xf   : > { %s1269_s11 = sshll.u32 (!%p192_p9), %s216_s10, 8  ;;  %s1333_s13 = sshll.u32 (!%p192_p9), %s1755_s22, 12 }
  0x10   : > { %s2224_s17 = scalar_lea.hbm (!%p192_p9), %s2277_s5, %s1333_s13  ;;  %s2232_s22 = scalar_lea.sflag (!%p192_p9), [#allocation3], %s216_s10 }
  0x11   : > { %s1701_s25 = smov (!%p192_p9), [#allocation2]  }
  0x12   : > { %s1643_s26 = sshll.u32 (!%p192_p9), %s1701_s25, 4  ;;  %s1644_s26 = int_to_ptr.vmem [resolvable:$false] %s1643_s26 }
  0x13   : > { %v1489_v0 = vld [vmem:[%s2273_s1 + $0x8] sm:$0xff]   ;;  %v1490_v1 = vld [vmem:[%s2273_s1] sm:$0xff]   ;;  %v1507_v2 = vld [vmem:[%s2275_s3 + $0x18] sm:$0xff]   ;;  %s2285_s7 = smov (!%p220_p10, %s1270_s7), 63  ;;  %vm362_vm0 = vcmask 261120   ;;  %vm659_vm1 = vcmask 523264  }
  0x14   : > { %1372 = vmatprep.subr.bf16.mxu0 %v1489_v0  ;;  %1408 = vmatprep.subr.bf16.mxu1 %v1507_v2  ;;  %s1271_s12 = sshll.u32 %s2285_s7, 2  ;;  %v1508_v19 = vld [vmem:[%s2275_s3 + $0x10] sm:$0xff]   ;;  %v1509_v20 = vld [vmem:[%s2275_s3 + $0x8] sm:$0xff]   ;;  %v1510_v21 = vld [vmem:[%s2275_s3] sm:$0xff]   ;;  %s1645_s30 = scalar_lea.vmem %s1644_s26, 8192 }
  0x15   : > { %1373 = vmatpush3.bf16.msra.mxu0 %v1489_v0  ;;  %1409 = vmatpush3.bf16.msra.mxu1 %v1507_v2  ;;  %s1795_s15 = scalar_lea.vmem %s2272_s0, %s1271_s12  ;;  %v1841_v24 = vld [vmem:[%s2274_s2] ss:$0 sm:$0xff]  ;;  %s2156_s12 = scalar_lea.vmem [#allocation2], %s1269_s11 }
  0x16   : > { %1374 = vmatprep.subr.bf16.mxu0 %v1490_v1  ;;  %v1491_v3 = vld [vmem:[%s1795_s15] sm:$0xff]   ;;  %v1492_v4 = vld [vmem:[%s1795_s15 + $0x8] sm:$0xff]   ;;  %v1493_v5 = vld [vmem:[%s1795_s15 + $0x10] sm:$0xff]   ;;  %1410 = vmatprep.subr.bf16.mxu1 %v1508_v19  ;;  %s1203_s14 = sshll.u32 %s2156_s12, 4  ;;  %s2226_s14 = int_to_ptr.vmem [resolvable:$true] %s1203_s14 }
  0x17   : > { %1376 = vmatprep.mubr.msk.bf16.mxu0 %vm362_vm0, %v1491_v3  ;;  %v1494_v6 = vld [vmem:[%s1795_s15 + $0x18] sm:$0xff]   ;;  %v1495_v7 = vld [vmem:[%s1795_s15 + $0x20] sm:$0xff]   ;;  %v1496_v8 = vld [vmem:[%s1795_s15 + $0x28] sm:$0xff]   ;;  %s1639_s23 = scalar_lea.vmem %s2226_s14, 4096  ;;  %p1646_p0 = scmp.lt.s32.totalorder %s2226_s14, %s1644_s26 }
  0x18   : > { %v1497_v9 = vld [vmem:[%s1795_s15 + $0x30] sm:$0xff]   ;;  %v1498_v10 = vld [vmem:[%s1795_s15 + $0x38] sm:$0xff]   ;;  %v1499_v11 = vld [vmem:[%s1795_s15 + $0x40] sm:$0xff]   ;;  %p1640_p11 = scmp.ne.s32.totalorder %s2226_s14, %s1639_s23  ;;  %p1647_p1 = scmp.lt.s32.totalorder %s1645_s30, %s1639_s23 }
  0x19   : > { %1375 = vmatpush3.bf16.msra.mxu0 %v1490_v1  ;;  %v1500_v12 = vld [vmem:[%s1795_s15 + $0x48] sm:$0xff]   ;;  %v1501_v13 = vld [vmem:[%s1795_s15 + $0x50] sm:$0xff]   ;;  %v1502_v14 = vld [vmem:[%s1795_s15 + $0x58] sm:$0xff]   ;;  %1411 = vmatpush3.bf16.msra.mxu1 %v1508_v19 }
  0x1a   : > { %v1503_v15 = vld [vmem:[%s1795_s15 + $0x60] sm:$0xff]   ;;  %v1504_v16 = vld [vmem:[%s1795_s15 + $0x68] sm:$0xff]   ;;  %v1505_v17 = vld [vmem:[%s1795_s15 + $0x70] sm:$0xff]   ;;  %1412 = vmatprep.subr.bf16.mxu1 %v1509_v20  ;;  %p1641_p12 = pnand %p1640_p11, %p1772_p5  ;;  %p1648_p2 = por %p1647_p1, %p1646_p0 }
  0x1b   : > { %v1506_v18 = vld [vmem:[%s1795_s15 + $0x78] sm:$0xff]  }
  0x1c   : > { %1377 = vmatmul.mubr.msk.bf16.vlgmr.msra.gmra.mxu0 %vm362_vm0, %v1492_v4  ;;  %p1642_p13 = pneg %p1641_p12 }
  0x1d   : > { %1380 = vmatprep.mubr.msk.bf16.mxu0 %vm362_vm0, %v1493_v5  ;;  %1413 = vmatpush3.bf16.msra.mxu1 %v1509_v20 }
  0x1e   : > { %1414 = vmatprep.subr.bf16.mxu1 %v1510_v21  ;;  %p1649_p3 = pnand %p1648_p2, %p1642_p13 }
  0x21   : > { %1415 = vmatpush3.bf16.msra.mxu1 %v1510_v21 }
  0x24   : > { %1381 = vmatmul.mubr.msk.bf16.gmra.mxu0 %vm362_vm0, %v1494_v6 }
  0x25   : > { %1384 = vmatprep.mubr.msk.bf16.mxu0 %vm362_vm0, %v1495_v7 }
  0x2c   : > { %1385 = vmatmul.mubr.msk.bf16.gmra.mxu0 %vm362_vm0, %v1496_v8 }
  0x2d   : > { %1388 = vmatprep.mubr.msk.bf16.mxu0 %vm362_vm0, %v1497_v9 }
  0x34   : > { %1389 = vmatmul.mubr.msk.bf16.gmra.mxu0 %vm362_vm0, %v1498_v10 }
  0x35   : > { %1392 = vmatprep.mubr.msk.bf16.mxu0 %vm362_vm0, %v1499_v11 }
  0x3c   : > { %1393 = vmatmul.mubr.msk.bf16.gmra.mxu0 %vm362_vm0, %v1500_v12 }
  0x3d   : > { %1396 = vmatprep.mubr.msk.bf16.mxu0 %vm362_vm0, %v1501_v13 }
  0x44   : > { %1397 = vmatmul.mubr.msk.bf16.gmra.mxu0 %vm362_vm0, %v1502_v14 }
  0x45   : > { %1400 = vmatprep.mubr.msk.bf16.mxu0 %vm362_vm0, %v1503_v15 }
  0x4c   : > { %1401 = vmatmul.mubr.msk.bf16.gmra.mxu0 %vm362_vm0, %v1504_v16 }
  0x4d   : > { %1404 = vmatprep.mubr.msk.bf16.mxu0 %vm362_vm0, %v1505_v17 }
  0x54   : > { %1405 = vmatmul.mubr.msk.bf16.gmra.mxu0 %vm362_vm0, %v1506_v18 }
  0xdc   : > { %v1378_v22 = vpop.f32.mrf.mxu0 }
  0xdd   : > { %v454_v28 = vadd.f32 %v1378_v22, %v1841_v24 }
  0xde   : > { %v445_v23 = vpop.f32.mrf.mxu0 }
  0xdf   : > { %v446_v26 = vadd.f32 %v1841_v24, %v445_v23  ;;  %v574_v35 = vmax.f32 %v454_v28, 0.0 }
  0xe0   : > { %v1379_v25 = vpop.f32.mrf.mxu0 }
  0xe1   : > { %v457_v27 = vadd.f32 %v1379_v25, %v1841_v24  ;;  %v572_v33 = vmax.f32 %v446_v26, 0.0 }
  0xe2   : > { %v448_v29 = vpop.f32.mrf.mxu0 }
  0xe3   : > { %v449_v30 = vadd.f32 %v1841_v24, %v448_v29  ;;  %v575_v31 = vmax.f32 %v457_v27, 0.0 }
  0xe4   : > { %v1382_v32 = vpop.f32.mrf.mxu0 }
  0xe5   : > { %v573_v34 = vmax.f32 %v449_v30, 0.0  ;;  %v605_v38 = vpack.c.bf16 %v575_v31, %v574_v35  ;;  %v470_v42 = vadd.f32 %v1382_v32, %v1841_v24 }
  0xe6   : > { %v461_v36 = vpop.f32.mrf.mxu0 }
  0xe7   : > { %v604_v37 = vpack.c.bf16 %v573_v34, %v572_v33  ;;  %v462_v40 = vadd.f32 %v1841_v24, %v461_v36  ;;  %v578_v49 = vmax.f32 %v470_v42, 0.0 }
  0xe8   : > { %v1383_v39 = vpop.f32.mrf.mxu0 }
  0xe9   : > { %v473_v41 = vadd.f32 %v1383_v39, %v1841_v24  ;;  %1416 = vmatprep.mubr.msk.bf16.mxu1 %vm659_vm1, %v604_v37  ;;  %v576_v47 = vmax.f32 %v462_v40, 0.0 }
  0xea   : > { %v464_v43 = vpop.f32.mrf.mxu0  ;;  %1417 = vmatmul.mubr.msk.bf16.vlgmr.msra.gmra.mxu1 %vm659_vm1, %v605_v38 }
  0xeb   : > { %v465_v44 = vadd.f32 %v1841_v24, %v464_v43  ;;  %v579_v45 = vmax.f32 %v473_v41, 0.0 }
  0xec   : > { %v1386_v46 = vpop.f32.mrf.mxu0 }
  0xed   : > { %v577_v48 = vmax.f32 %v465_v44, 0.0  ;;  %v607_v52 = vpack.c.bf16 %v579_v45, %v578_v49  ;;  %v486_v56 = vadd.f32 %v1386_v46, %v1841_v24 }
  0xee   : > { %v477_v50 = vpop.f32.mrf.mxu0 }
  0xef   : > { %v606_v51 = vpack.c.bf16 %v577_v48, %v576_v47  ;;  %v478_v54 = vadd.f32 %v1841_v24, %v477_v50  ;;  %v582_v63 = vmax.f32 %v486_v56, 0.0 }
  0xf0   : > { %v1387_v53 = vpop.f32.mrf.mxu0 }
  0xf1   : > { %v489_v55 = vadd.f32 %v1387_v53, %v1841_v24  ;;  %1420 = vmatprep.mubr.msk.bf16.mxu1 %vm659_vm1, %v606_v51  ;;  %v580_v61 = vmax.f32 %v478_v54, 0.0 }
  0xf2   : > { %v480_v57 = vpop.f32.mrf.mxu0  ;;  %1421 = vmatmul.mubr.msk.bf16.gmra.mxu1 %vm659_vm1, %v607_v52 }
  0xf3   : > { %v481_v58 = vadd.f32 %v1841_v24, %v480_v57  ;;  %v583_v59 = vmax.f32 %v489_v55, 0.0 }
  0xf4   : > { %v1390_v60 = vpop.f32.mrf.mxu0 }
  0xf5   : > { %v581_v62 = vmax.f32 %v481_v58, 0.0  ;;  %v609_v2 = vpack.c.bf16 %v583_v59, %v582_v63  ;;  %v502_v6 = vadd.f32 %v1390_v60, %v1841_v24 }
  0xf6   : > { %v493_v0 = vpop.f32.mrf.mxu0 }
  0xf7   : > { %v608_v1 = vpack.c.bf16 %v581_v62, %v580_v61  ;;  %v494_v4 = vadd.f32 %v1841_v24, %v493_v0  ;;  %v586_v13 = vmax.f32 %v502_v6, 0.0 }
  0xf8   : > { %v1391_v3 = vpop.f32.mrf.mxu0 }
  0xf9   : > { %v505_v5 = vadd.f32 %v1391_v3, %v1841_v24  ;;  %1424 = vmatprep.mubr.msk.bf16.mxu1 %vm659_vm1, %v608_v1  ;;  %v584_v11 = vmax.f32 %v494_v4, 0.0 }
  0xfa   : > { %v496_v7 = vpop.f32.mrf.mxu0  ;;  %1425 = vmatmul.mubr.msk.bf16.gmra.mxu1 %vm659_vm1, %v609_v2 }
  0xfb   : > { %v497_v8 = vadd.f32 %v1841_v24, %v496_v7  ;;  %v587_v9 = vmax.f32 %v505_v5, 0.0 }
  0xfc   : > { %v1394_v10 = vpop.f32.mrf.mxu0 }
  0xfd   : > { %v585_v12 = vmax.f32 %v497_v8, 0.0  ;;  %v611_v16 = vpack.c.bf16 %v587_v9, %v586_v13  ;;  %v518_v20 = vadd.f32 %v1394_v10, %v1841_v24  ;;  %v1894_v8 = vld [vmem:[%s2276_s4] ss:$0 sm:$0xff] }
  0xfe   : > { %v509_v14 = vpop.f32.mrf.mxu0 }
  0xff   : > { %v610_v15 = vpack.c.bf16 %v585_v12, %v584_v11  ;;  %v510_v18 = vadd.f32 %v1841_v24, %v509_v14  ;;  %v590_v28 = vmax.f32 %v518_v20, 0.0 }
 0x100   : > { %v1395_v17 = vpop.f32.mrf.mxu0 }
 0x101   : > { %v521_v19 = vadd.f32 %v1395_v17, %v1841_v24  ;;  %1428 = vmatprep.mubr.msk.bf16.mxu1 %vm659_vm1, %v610_v15  ;;  %v588_v26 = vmax.f32 %v510_v18, 0.0 }
 0x102   : > { %v512_v21 = vpop.f32.mrf.mxu0  ;;  %1429 = vmatmul.mubr.msk.bf16.gmra.mxu1 %vm659_vm1, %v611_v16 }
 0x103   : > { %v513_v22 = vadd.f32 %v1841_v24, %v512_v21  ;;  %v591_v23 = vmax.f32 %v521_v19, 0.0 }
 0x104   : > { %v1398_v25 = vpop.f32.mrf.mxu0 }
 0x105   : > { %v589_v27 = vmax.f32 %v513_v22, 0.0  ;;  %v613_v31 = vpack.c.bf16 %v591_v23, %v590_v28  ;;  %v534_v35 = vadd.f32 %v1398_v25, %v1841_v24 }
 0x106   : > { %v525_v29 = vpop.f32.mrf.mxu0 }
 0x107   : > { %v612_v30 = vpack.c.bf16 %v589_v27, %v588_v26  ;;  %v526_v33 = vadd.f32 %v1841_v24, %v525_v29  ;;  %v594_v42 = vmax.f32 %v534_v35, 0.0 }
 0x108   : > { %v1399_v32 = vpop.f32.mrf.mxu0 }
 0x109   : > { %v537_v34 = vadd.f32 %v1399_v32, %v1841_v24  ;;  %1432 = vmatprep.mubr.msk.bf16.mxu1 %vm659_vm1, %v612_v30  ;;  %v592_v40 = vmax.f32 %v526_v33, 0.0 }
 0x10a   : > { %v528_v36 = vpop.f32.mrf.mxu0  ;;  %1433 = vmatmul.mubr.msk.bf16.gmra.mxu1 %vm659_vm1, %v613_v31 }
 0x10b   : > { %v529_v37 = vadd.f32 %v1841_v24, %v528_v36  ;;  %v595_v38 = vmax.f32 %v537_v34, 0.0 }
 0x10c   : > { %v1402_v39 = vpop.f32.mrf.mxu0 }
 0x10d   : > { %v593_v41 = vmax.f32 %v529_v37, 0.0  ;;  %v615_v45 = vpack.c.bf16 %v595_v38, %v594_v42  ;;  %v550_v49 = vadd.f32 %v1402_v39, %v1841_v24 }
 0x10e   : > { %v541_v43 = vpop.f32.mrf.mxu0 }
 0x10f   : > { %v614_v44 = vpack.c.bf16 %v593_v41, %v592_v40  ;;  %v542_v47 = vadd.f32 %v1841_v24, %v541_v43  ;;  %v598_v56 = vmax.f32 %v550_v49, 0.0 }
 0x110   : > { %v1403_v46 = vpop.f32.mrf.mxu0 }
 0x111   : > { %v553_v48 = vadd.f32 %v1403_v46, %v1841_v24  ;;  %1436 = vmatprep.mubr.msk.bf16.mxu1 %vm659_vm1, %v614_v44  ;;  %v596_v54 = vmax.f32 %v542_v47, 0.0 }
 0x112   : > { %v544_v50 = vpop.f32.mrf.mxu0  ;;  %1437 = vmatmul.mubr.msk.bf16.gmra.mxu1 %vm659_vm1, %v615_v45 }
 0x113   : > { %v545_v51 = vadd.f32 %v1841_v24, %v544_v50  ;;  %v599_v52 = vmax.f32 %v553_v48, 0.0 }
 0x114   : > { %v1406_v53 = vpop.f32.mrf.mxu0 }
 0x115   : > { %v597_v55 = vmax.f32 %v545_v51, 0.0  ;;  %v617_v59 = vpack.c.bf16 %v599_v52, %v598_v56  ;;  %v566_v63 = vadd.f32 %v1406_v53, %v1841_v24 }
 0x116   : > { %v557_v57 = vpop.f32.mrf.mxu0 }
 0x117   : > { %v616_v58 = vpack.c.bf16 %v597_v55, %v596_v54  ;;  %v558_v61 = vadd.f32 %v1841_v24, %v557_v57  ;;  %v602_v5 = vmax.f32 %v566_v63, 0.0 }
 0x118   : > { %v1407_v60 = vpop.f32.mrf.mxu0 }
 0x119   : > { %v569_v62 = vadd.f32 %v1407_v60, %v1841_v24  ;;  %1440 = vmatprep.mubr.msk.bf16.mxu1 %vm659_vm1, %v616_v58  ;;  %v600_v3 = vmax.f32 %v558_v61, 0.0 }
 0x11a   : > { %v560_v0 = vpop.f32.mrf.mxu0  ;;  %1441 = vmatmul.mubr.msk.bf16.gmra.mxu1 %vm659_vm1, %v617_v59 }
 0x11b   : > { %v561_v1 = vadd.f32 %v1841_v24, %v560_v0  ;;  %v603_v2 = vmax.f32 %v569_v62, 0.0 }
 0x11d   : > { %v601_v4 = vmax.f32 %v561_v1, 0.0  ;;  %v619_v7 = vpack.c.bf16 %v603_v2, %v602_v5 }
 0x11f   : > { %v618_v6 = vpack.c.bf16 %v601_v4, %v600_v3 }
 0x121   : > { %1444 = vmatprep.mubr.msk.bf16.mxu1 %vm659_vm1, %v618_v6 }
 0x122   : > { %1445 = vmatmul.mubr.msk.bf16.gmra.mxu1 %vm659_vm1, %v619_v7 }
 0x1aa   : > { %v1418_v9 = vpop.f32.mrf.mxu1 }
 0x1ab   : > { %v1897_v10 = vadd.f32 %v1418_v9, %v1894_v8 }
 0x1ac   : > { %v742_v24 = vpop.f32.mrf.mxu1 }
 0x1ad   : > { %v1900_v11 = vadd.f32 %v1894_v8, %v742_v24  ;;  %873 = vmax.xlane.f32.xlu1 %v1897_v10 }
 0x1ae   : > { %v1419_v12 = vpop.f32.mrf.mxu1 }
 0x1af   : > { %v1904_v13 = vadd.f32 %v1419_v12, %v1894_v8  ;;  %869 = vmax.xlane.f32.xlu0 %v1900_v11 }
 0x1b0   : > { %v745_v14 = vpop.f32.mrf.mxu1 }
 0x1b1   : > { %v1908_v15 = vadd.f32 %v1894_v8, %v745_v14  ;;  %875 = vmax.xlane.f32.xlu1 %v1904_v13 }
 0x1b2   : > { %v1422_v16 = vpop.f32.mrf.mxu1 }
 0x1b3   : > { %871 = vmax.xlane.f32.xlu0 %v1908_v15  ;;  %v1913_v18 = vadd.f32 %v1422_v16, %v1894_v8 }
 0x1b4   : > { %v758_v17 = vpop.f32.mrf.mxu1 }
 0x1b5   : > { %v1920_v22 = vadd.f32 %v1894_v8, %v758_v17 }
 0x1b6   : > { %v1423_v19 = vpop.f32.mrf.mxu1 }
 0x1b7   : > { %v1916_v20 = vadd.f32 %v1423_v19, %v1894_v8  ;;  %881 = vmax.xlane.f32.xlu0 %v1913_v18 }
 0x1b8   : > { %v761_v21 = vpop.f32.mrf.mxu1 }
 0x1b9   : > { %883 = vmax.xlane.f32.xlu1 %v1916_v20  ;;  %v1924_v25 = vadd.f32 %v1894_v8, %v761_v21 }
 0x1ba   : > { %v1426_v23 = vpop.f32.mrf.mxu1 }
 0x1bb   : > { %877 = vmax.xlane.f32.xlu0 %v1920_v22  ;;  %v1928_v27 = vadd.f32 %v1426_v23, %v1894_v8 }
 0x1bc   : > { %v774_v26 = vpop.f32.mrf.mxu1 }
 0x1bd   : > { %879 = vmax.xlane.f32.xlu1 %v1924_v25  ;;  %v1936_v31 = vadd.f32 %v1894_v8, %v774_v26 }
 0x1be   : > { %v1427_v28 = vpop.f32.mrf.mxu1 }
 0x1bf   : > { %v1932_v29 = vadd.f32 %v1427_v28, %v1894_v8  ;;  %889 = vmax.xlane.f32.xlu0 %v1928_v27 }
 0x1c0   : > { %v777_v30 = vpop.f32.mrf.mxu1 }
 0x1c1   : > { %891 = vmax.xlane.f32.xlu1 %v1932_v29  ;;  %v1940_v33 = vadd.f32 %v1894_v8, %v777_v30 }
 0x1c2   : > { %v1430_v32 = vpop.f32.mrf.mxu1 }
 0x1c3   : > { %885 = vmax.xlane.f32.xlu0 %v1936_v31  ;;  %v1944_v35 = vadd.f32 %v1430_v32, %v1894_v8 }
 0x1c4   : > { %v790_v34 = vpop.f32.mrf.mxu1 }
 0x1c5   : > { %887 = vmax.xlane.f32.xlu1 %v1940_v33  ;;  %v1952_v39 = vadd.f32 %v1894_v8, %v790_v34 }
 0x1c6   : > { %v1431_v36 = vpop.f32.mrf.mxu1 }
 0x1c7   : > { %v1948_v37 = vadd.f32 %v1431_v36, %v1894_v8  ;;  %897 = vmax.xlane.f32.xlu0 %v1944_v35 }
 0x1c8   : > { %v793_v38 = vpop.f32.mrf.mxu1 }
 0x1c9   : > { %899 = vmax.xlane.f32.xlu1 %v1948_v37  ;;  %v1956_v41 = vadd.f32 %v1894_v8, %v793_v38 }
 0x1ca   : > { %v1434_v40 = vpop.f32.mrf.mxu1 }
 0x1cb   : > { %893 = vmax.xlane.f32.xlu0 %v1952_v39  ;;  %v1960_v43 = vadd.f32 %v1434_v40, %v1894_v8 }
 0x1cc   : > { %v806_v42 = vpop.f32.mrf.mxu1 }
 0x1cd   : > { %895 = vmax.xlane.f32.xlu1 %v1956_v41  ;;  %v1968_v47 = vadd.f32 %v1894_v8, %v806_v42 }
 0x1ce   : > { %v1435_v44 = vpop.f32.mrf.mxu1 }
 0x1cf   : > { %v1964_v45 = vadd.f32 %v1435_v44, %v1894_v8  ;;  %905 = vmax.xlane.f32.xlu0 %v1960_v43 }
 0x1d0   : > { %v809_v46 = vpop.f32.mrf.mxu1 }
 0x1d1   : > { %907 = vmax.xlane.f32.xlu1 %v1964_v45  ;;  %v1972_v49 = vadd.f32 %v1894_v8, %v809_v46 }
 0x1d2   : > { %v1438_v48 = vpop.f32.mrf.mxu1 }
 0x1d3   : > { %901 = vmax.xlane.f32.xlu0 %v1968_v47  ;;  %v1976_v51 = vadd.f32 %v1438_v48, %v1894_v8 }
 0x1d4   : > { %v822_v50 = vpop.f32.mrf.mxu1 }
 0x1d5   : > { %903 = vmax.xlane.f32.xlu1 %v1972_v49  ;;  %v1984_v55 = vadd.f32 %v1894_v8, %v822_v50 }
 0x1d6   : > { %v1439_v52 = vpop.f32.mrf.mxu1 }
 0x1d7   : > { %v1980_v53 = vadd.f32 %v1439_v52, %v1894_v8  ;;  %913 = vmax.xlane.f32.xlu0 %v1976_v51 }
 0x1d8   : > { %v825_v54 = vpop.f32.mrf.mxu1 }
 0x1d9   : > { %915 = vmax.xlane.f32.xlu1 %v1980_v53  ;;  %v1988_v57 = vadd.f32 %v1894_v8, %v825_v54 }
 0x1da   : > { %v1442_v56 = vpop.f32.mrf.mxu1 }
 0x1db   : > { %909 = vmax.xlane.f32.xlu0 %v1984_v55  ;;  %v1992_v59 = vadd.f32 %v1442_v56, %v1894_v8 }
 0x1dc   : > { %v838_v58 = vpop.f32.mrf.mxu1 }
 0x1dd   : > { %911 = vmax.xlane.f32.xlu1 %v1988_v57  ;;  %v2000_v63 = vadd.f32 %v1894_v8, %v838_v58 }
 0x1de   : > { %v1443_v60 = vpop.f32.mrf.mxu1 }
 0x1df   : > { %v1996_v61 = vadd.f32 %v1443_v60, %v1894_v8  ;;  %921 = vmax.xlane.f32.xlu0 %v1992_v59 }
 0x1e0   : > { %v841_v62 = vpop.f32.mrf.mxu1 }
 0x1e1   : > { %923 = vmax.xlane.f32.xlu1 %v1996_v61  ;;  %v2004_v1 = vadd.f32 %v1894_v8, %v841_v62 }
 0x1e2   : > { %v1446_v0 = vpop.f32.mrf.mxu1 }
 0x1e3   : > { %917 = vmax.xlane.f32.xlu0 %v2000_v63  ;;  %v2013_v6 = vadd.f32 %v1446_v0, %v1894_v8 }
 0x1e4   : > { %v854_v2 = vpop.f32.mrf.mxu1 }
 0x1e5   : > { %v2008_v3 = vadd.f32 %v1894_v8, %v854_v2  ;;  %919 = vmax.xlane.f32.xlu1 %v2004_v1 }
 0x1e6   : > { %v1447_v4 = vpop.f32.mrf.mxu1 }
 0x1e7   : > { %925 = vmax.xlane.f32.xlu0 %v2008_v3  ;;  %v2021_v9 = vadd.f32 %v1447_v4, %v1894_v8 }
 0x1e8   : > { %v857_v5 = vpop.f32.mrf.mxu1 }
 0x1e9   : > { %v2016_v7 = vadd.f32 %v1894_v8, %v857_v5 }
 0x1eb   : > { %927 = vmax.xlane.f32.xlu1 %v2016_v7  ;;  %929 = vmax.xlane.f32.xlu0 %v2013_v6 }
 0x1ef   : > { %931 = vmax.xlane.f32.xlu1 %v2021_v9 }
 0x236   : > { %v874_v24 = vpop.xlane.xlu1 %873 }
 0x237   : > { %v935_v12 = vsub.f32 %v1897_v10, %v874_v24 }
 0x238   : > { %v870_v14 = vpop.xlane.xlu0 %869 }
 0x239   : > { %v969_v16 = vmul.f32 1.442695, %v935_v12  ;;  %v933_v17 = vsub.f32 %v1900_v11, %v870_v14 }
 0x23a   : > { %v876_v19 = vpop.xlane.xlu1 %875 }
 0x23b   : > { %1511 = vpow2.f32 %v969_v16  ;;  %v965_v21 = vmul.f32 1.442695, %v933_v17  ;;  %v936_v23 = vsub.f32 %v1904_v13, %v876_v19 }
 0x23c   : > { %v872_v26 = vpop.xlane.xlu0 %871 }
 0x23d   : > { %v971_v28 = vmul.f32 1.442695, %v936_v23  ;;  %v934_v30 = vsub.f32 %v1908_v15, %v872_v26  ;;  %1513 = vpow2.f32 %v965_v21 }
 0x23f   : > { %1515 = vpow2.f32 %v971_v28  ;;  %v967_v8 = vmul.f32 1.442695, %v934_v30 }
 0x240   : > { %v882_v32 = vpop.xlane.xlu0 %881 }
 0x241   : > { %v939_v34 = vsub.f32 %v1913_v18, %v882_v32  ;;  %1517 = vpow2.f32 %v967_v8 }
 0x242   : > { %v884_v10 = vpop.xlane.xlu1 %883 }
 0x243   : > { %v977_v36 = vmul.f32 1.442695, %v939_v34  ;;  %v940_v11 = vsub.f32 %v1916_v20, %v884_v10 }
 0x244   : > { %v878_v38 = vpop.xlane.xlu0 %877 }
 0x245   : > { %1519 = vpow2.f32 %v977_v36  ;;  %v979_v40 = vmul.f32 1.442695, %v940_v11  ;;  %v937_v13 = vsub.f32 %v1920_v22, %v878_v38 }
 0x246   : > { %v880_v42 = vpop.xlane.xlu1 %879 }
 0x247   : > { %1521 = vpow2.f32 %v979_v40  ;;  %v973_v44 = vmul.f32 1.442695, %v937_v13  ;;  %v938_v15 = vsub.f32 %v1924_v25, %v880_v42 }
 0x248   : > { %v2032_v46 = vpop.eup %1511  ;;  %v890_v48 = vpop.xlane.xlu0 %889 }
 0x249   : > { %1523 = vpow2.f32 %v973_v44  ;;  %v975_v18 = vmul.f32 1.442695, %v938_v15  ;;  %v943_v50 = vsub.f32 %v1928_v27, %v890_v48  ;;  %1033 = vadd.xlane.f32.xlu0 %v2032_v46 }
 0x24a   : > { %v892_v20 = vpop.xlane.xlu1 %891  ;;  %v2036_v52 = vpop.eup %1513 }
 0x24b   : > { %1525 = vpow2.f32 %v975_v18  ;;  %v985_v54 = vmul.f32 1.442695, %v943_v50  ;;  %v944_v22 = vsub.f32 %v1932_v29, %v892_v20 }
 0x24c   : > { %v2039_v56 = vpop.eup %1515  ;;  %v886_v58 = vpop.xlane.xlu0 %885 }
 0x24d   : > { %1527 = vpow2.f32 %v985_v54  ;;  %v987_v25 = vmul.f32 1.442695, %v944_v22  ;;  %v941_v60 = vsub.f32 %v1936_v31, %v886_v58  ;;  %1035 = vadd.xlane.f32.xlu1 %v2039_v56  ;;  %1029 = vadd.xlane.f32.xlu0 %v2036_v52 }
 0x24e   : > { %v888_v27 = vpop.xlane.xlu1 %887  ;;  %v2045_v2 = vpop.eup %1517 }
 0x24f   : > { %1529 = vpow2.f32 %v987_v25  ;;  %v981_v62 = vmul.f32 1.442695, %v941_v60  ;;  %v942_v0 = vsub.f32 %v1940_v33, %v888_v27 }
 0x250   : > { %v898_v4 = vpop.xlane.xlu0 %897 }
 0x251   : > { %1531 = vpow2.f32 %v981_v62  ;;  %v983_v29 = vmul.f32 1.442695, %v942_v0  ;;  %v947_v5 = vsub.f32 %v1944_v35, %v898_v4  ;;  %1031 = vadd.xlane.f32.xlu1 %v2045_v2 }
 0x252   : > { %v2049_v24 = vpop.eup %1519  ;;  %v900_v31 = vpop.xlane.xlu1 %899 }
 0x253   : > { %1533 = vpow2.f32 %v983_v29  ;;  %v993_v12 = vmul.f32 1.442695, %v947_v5  ;;  %v948_v14 = vsub.f32 %v1948_v37, %v900_v31  ;;  %1041 = vadd.xlane.f32.xlu0 %v2049_v24 }
 0x254   : > { %v2053_v16 = vpop.eup %1521  ;;  %v894_v33 = vpop.xlane.xlu0 %893 }
 0x255   : > { %1535 = vpow2.f32 %v993_v12  ;;  %v995_v17 = vmul.f32 1.442695, %v948_v14  ;;  %v945_v19 = vsub.f32 %v1952_v39, %v894_v33  ;;  %1043 = vadd.xlane.f32.xlu1 %v2053_v16 }
 0x256   : > { %v2057_v35 = vpop.eup %1523  ;;  %v896_v21 = vpop.xlane.xlu1 %895 }
 0x257   : > { %1537 = vpow2.f32 %v995_v17  ;;  %v989_v23 = vmul.f32 1.442695, %v945_v19  ;;  %v946_v26 = vsub.f32 %v1956_v41, %v896_v21  ;;  %1037 = vadd.xlane.f32.xlu0 %v2057_v35 }
 0x258   : > { %v2061_v37 = vpop.eup %1525  ;;  %v906_v28 = vpop.xlane.xlu0 %905 }
 0x259   : > { %1539 = vpow2.f32 %v989_v23  ;;  %v991_v30 = vmul.f32 1.442695, %v946_v26  ;;  %v951_v8 = vsub.f32 %v1960_v43, %v906_v28  ;;  %1039 = vadd.xlane.f32.xlu1 %v2061_v37 }
 0x25a   : > { %v2065_v39 = vpop.eup %1527  ;;  %v908_v32 = vpop.xlane.xlu1 %907 }
 0x25b   : > { %1541 = vpow2.f32 %v991_v30  ;;  %v1001_v34 = vmul.f32 1.442695, %v951_v8  ;;  %v952_v10 = vsub.f32 %v1964_v45, %v908_v32  ;;  %1049 = vadd.xlane.f32.xlu0 %v2065_v39 }
 0x25c   : > { %v2069_v41 = vpop.eup %1529  ;;  %v902_v36 = vpop.xlane.xlu0 %901 }
 0x25d   : > { %1543 = vpow2.f32 %v1001_v34  ;;  %v1003_v11 = vmul.f32 1.442695, %v952_v10  ;;  %v949_v38 = vsub.f32 %v1968_v47, %v902_v36  ;;  %1051 = vadd.xlane.f32.xlu1 %v2069_v41 }
 0x25e   : > { %v2073_v43 = vpop.eup %1531  ;;  %v904_v40 = vpop.xlane.xlu1 %903 }
 0x25f   : > { %1545 = vpow2.f32 %v1003_v11  ;;  %v997_v13 = vmul.f32 1.442695, %v949_v38  ;;  %v950_v42 = vsub.f32 %v1972_v49, %v904_v40  ;;  %1045 = vadd.xlane.f32.xlu0 %v2073_v43 }
 0x260   : > { %v2077_v45 = vpop.eup %1533  ;;  %v914_v44 = vpop.xlane.xlu0 %913 }
 0x261   : > { %1547 = vpow2.f32 %v997_v13  ;;  %v999_v15 = vmul.f32 1.442695, %v950_v42  ;;  %v955_v48 = vsub.f32 %v1976_v51, %v914_v44  ;;  %1047 = vadd.xlane.f32.xlu1 %v2077_v45 }
 0x262   : > { %v2081_v47 = vpop.eup %1535  ;;  %v916_v18 = vpop.xlane.xlu1 %915 }
 0x263   : > { %1549 = vpow2.f32 %v999_v15  ;;  %v1009_v50 = vmul.f32 1.442695, %v955_v48  ;;  %v956_v20 = vsub.f32 %v1980_v53, %v916_v18  ;;  %1057 = vadd.xlane.f32.xlu0 %v2081_v47 }
 0x264   : > { %v2085_v49 = vpop.eup %1537  ;;  %v910_v54 = vpop.xlane.xlu0 %909 }
 0x265   : > { %1551 = vpow2.f32 %v1009_v50  ;;  %v1011_v22 = vmul.f32 1.442695, %v956_v20  ;;  %v953_v58 = vsub.f32 %v1984_v55, %v910_v54  ;;  %1059 = vadd.xlane.f32.xlu1 %v2085_v49 }
 0x266   : > { %v2089_v51 = vpop.eup %1539  ;;  %v912_v25 = vpop.xlane.xlu1 %911 }
 0x267   : > { %1553 = vpow2.f32 %v1011_v22  ;;  %v1005_v60 = vmul.f32 1.442695, %v953_v58  ;;  %v954_v27 = vsub.f32 %v1988_v57, %v912_v25  ;;  %1053 = vadd.xlane.f32.xlu0 %v2089_v51 }
 0x268   : > { %v2093_v53 = vpop.eup %1541  ;;  %v922_v62 = vpop.xlane.xlu0 %921 }
 0x269   : > { %1555 = vpow2.f32 %v1005_v60  ;;  %v1007_v0 = vmul.f32 1.442695, %v954_v27  ;;  %v959_v4 = vsub.f32 %v1992_v59, %v922_v62  ;;  %1055 = vadd.xlane.f32.xlu1 %v2093_v53 }
 0x26a   : > { %v2097_v55 = vpop.eup %1543  ;;  %v924_v29 = vpop.xlane.xlu1 %923 }
 0x26b   : > { %1557 = vpow2.f32 %v1007_v0  ;;  %v1017_v5 = vmul.f32 1.442695, %v959_v4  ;;  %v960_v31 = vsub.f32 %v1996_v61, %v924_v29  ;;  %1065 = vadd.xlane.f32.xlu0 %v2097_v55 }
 0x26c   : > { %v2101_v57 = vpop.eup %1545  ;;  %v918_v12 = vpop.xlane.xlu0 %917 }
 0x26d   : > { %1559 = vpow2.f32 %v1017_v5  ;;  %v1019_v14 = vmul.f32 1.442695, %v960_v31  ;;  %v957_v33 = vsub.f32 %v2000_v63, %v918_v12  ;;  %1067 = vadd.xlane.f32.xlu1 %v2101_v57 }
 0x26e   : > { %v2105_v59 = vpop.eup %1547  ;;  %v920_v17 = vpop.xlane.xlu1 %919 }
 0x26f   : > { %1561 = vpow2.f32 %v1019_v14  ;;  %v1013_v19 = vmul.f32 1.442695, %v957_v33  ;;  %v958_v21 = vsub.f32 %v2004_v1, %v920_v17  ;;  %1061 = vadd.xlane.f32.xlu0 %v2105_v59 }
 0x270   : > { %v2109_v61 = vpop.eup %1549  ;;  %v926_v23 = vpop.xlane.xlu0 %925 }
 0x271   : > { %1563 = vpow2.f32 %v1013_v19  ;;  %v1015_v26 = vmul.f32 1.442695, %v958_v21  ;;  %v961_v28 = vsub.f32 %v2008_v3, %v926_v23  ;;  %1063 = vadd.xlane.f32.xlu1 %v2109_v61 }
 0x272   : > { %v2113_v63 = vpop.eup %1551 }
 0x273   : > { %1565 = vpow2.f32 %v1015_v26  ;;  %v1021_v30 = vmul.f32 1.442695, %v961_v28  ;;  %1073 = vadd.xlane.f32.xlu0 %v2113_v63 }
 0x274   : > { %v2116_v8 = vpop.eup %1553  ;;  %v928_v1 = vpop.xlane.xlu1 %927 }
 0x275   : > { %v930_v32 = vpop.xlane.xlu0 %929  ;;  %1567 = vpow2.f32 %v1021_v30  ;;  %v962_v34 = vsub.f32 %v2016_v7, %v928_v1  ;;  %1075 = vadd.xlane.f32.xlu1 %v2116_v8 }
 0x276   : > { %v963_v10 = vsub.f32 %v2013_v6, %v930_v32  ;;  %v2121_v3 = vpop.eup %1555 }
 0x277   : > { %v1023_v36 = vmul.f32 1.442695, %v962_v34  ;;  %1069 = vadd.xlane.f32.xlu0 %v2121_v3 }
 0x278   : > { %v1025_v11 = vmul.f32 1.442695, %v963_v10  ;;  %v2124_v38 = vpop.eup %1557  ;;  %v932_v40 = vpop.xlane.xlu1 %931 }
 0x279   : > { %1569 = vpow2.f32 %v1023_v36  ;;  %v964_v13 = vsub.f32 %v2021_v9, %v932_v40  ;;  %1071 = vadd.xlane.f32.xlu1 %v2124_v38 }
 0x27a   : > { %v2128_v42 = vpop.eup %1559  ;;  %1571 = vpow2.f32 %v1025_v11 }
 0x27b   : > { %v1027_v6 = vmul.f32 1.442695, %v964_v13  ;;  %1081 = vadd.xlane.f32.xlu0 %v2128_v42 }
 0x27c   : > { %v2131_v7 = vpop.eup %1561 }
 0x27d   : > { %1573 = vpow2.f32 %v1027_v6  ;;  %1083 = vadd.xlane.f32.xlu1 %v2131_v7 }
 0x27e   : > { %v2134_v44 = vpop.eup %1563 }
 0x27f   : > { %1077 = vadd.xlane.f32.xlu0 %v2134_v44 }
 0x280   : > { %v2137_v15 = vpop.eup %1565 }
 0x281   : > { %1079 = vadd.xlane.f32.xlu1 %v2137_v15 }
 0x282   : > { %v2140_v9 = vpop.eup %1567 }
 0x283   : > { %1085 = vadd.xlane.f32.xlu0 %v2140_v9 }
 0x286   : > { %v2143_v48 = vpop.eup %1569 }
 0x287   : > { %v2145_v18 = vpop.eup %1571  ;;  %1087 = vadd.xlane.f32.xlu1 %v2143_v48 }
 0x288   : > { %1089 = vadd.xlane.f32.xlu0 %v2145_v18 }
 0x28a   : > { %v2149_v50 = vpop.eup %1573 }
 0x28b   : > { %1091 = vadd.xlane.f32.xlu1 %v2149_v50 }
 0x2d2   : > { %v1034_v20 = vpop.xlane.xlu0 %1033 }
 0x2d3   : > { %1575 = vrcp.f32 %v1034_v20 }
 0x2d6   : > { %v1036_v54 = vpop.xlane.xlu1 %1035  ;;  %v1030_v22 = vpop.xlane.xlu0 %1029 }
 0x2d7   : > { %1577 = vrcp.f32 %v1036_v54 }
 0x2d8   : > { %1579 = vrcp.f32 %v1030_v22 }
 0x2da   : > { %v1032_v58 = vpop.xlane.xlu1 %1031 }
 0x2db   : > { %1581 = vrcp.f32 %v1032_v58 }
 0x2dc   : > { %v1042_v25 = vpop.xlane.xlu0 %1041 }
 0x2dd   : > { %1583 = vrcp.f32 %v1042_v25 }
 0x2de   : > { %v1044_v60 = vpop.xlane.xlu1 %1043 }
 0x2df   : > { %1585 = vrcp.f32 %v1044_v60 }
 0x2e0   : > { %v1576_v27 = vpop.eup %1575  ;;  %v1038_v62 = vpop.xlane.xlu0 %1037 }
 0x2e1   : > { %v1127_v0 = vmul.f32 %v1576_v27, %v2032_v46  ;;  %1587 = vrcp.f32 %v1038_v62 }
 0x2e2   : > { %v1040_v4 = vpop.xlane.xlu1 %1039 }
 0x2e3   : > { %1159 = vst [vmem:[%s2156_s12 + $0x10] sm:$0xff] %v1127_v0  ;;  %1589 = vrcp.f32 %v1040_v4 }
 0x2e4   : > { %v1578_v29 = vpop.eup %1577  ;;  %v1050_v5 = vpop.xlane.xlu0 %1049 }
 0x2e5   : > { %v1580_v31 = vpop.eup %1579  ;;  %v1128_v12 = vmul.f32 %v1578_v29, %v2039_v56  ;;  %1591 = vrcp.f32 %v1050_v5 }
 0x2e6   : > { %v1125_v14 = vmul.f32 %v1580_v31, %v2036_v52  ;;  %v1052_v46 = vpop.xlane.xlu1 %1051 }
 0x2e7   : > { %1160 = vst [vmem:[%s2156_s12 + $0x18] sm:$0xff] %v1128_v12  ;;  %1593 = vrcp.f32 %v1052_v46 }
 0x2e8   : > { %v1582_v33 = vpop.eup %1581  ;;  %1157 = vst [vmem:[%s2156_s12] sm:$0xff] %v1125_v14  ;;  %v1046_v17 = vpop.xlane.xlu0 %1045 }
 0x2e9   : > { %v1126_v19 = vmul.f32 %v1582_v33, %v2045_v2  ;;  %1595 = vrcp.f32 %v1046_v17 }
 0x2ea   : > { %v1584_v21 = vpop.eup %1583  ;;  %v1048_v23 = vpop.xlane.xlu1 %1047 }
 0x2eb   : > { %1158 = vst [vmem:[%s2156_s12 + $0x8] sm:$0xff] %v1126_v19  ;;  %v1131_v56 = vmul.f32 %v1584_v21, %v2049_v24  ;;  %1597 = vrcp.f32 %v1048_v23 }
 0x2ec   : > { %v1586_v26 = vpop.eup %1585  ;;  %v1058_v52 = vpop.xlane.xlu0 %1057 }
 0x2ed   : > { %1163 = vst [vmem:[%s2156_s12 + $0x30] sm:$0xff] %v1131_v56  ;;  %v1132_v28 = vmul.f32 %v1586_v26, %v2053_v16  ;;  %1599 = vrcp.f32 %v1058_v52 }
 0x2ee   : > { %v1588_v30 = vpop.eup %1587  ;;  %v1060_v1 = vpop.xlane.xlu1 %1059 }
 0x2ef   : > { %1164 = vst [vmem:[%s2156_s12 + $0x38] sm:$0xff] %v1132_v28  ;;  %v1129_v2 = vmul.f32 %v1588_v30, %v2057_v35  ;;  %1601 = vrcp.f32 %v1060_v1 }
 0x2f0   : > { %v1590_v32 = vpop.eup %1589  ;;  %v1054_v34 = vpop.xlane.xlu0 %1053 }
 0x2f1   : > { %1161 = vst [vmem:[%s2156_s12 + $0x20] sm:$0xff] %v1129_v2  ;;  %v1130_v24 = vmul.f32 %v1590_v32, %v2061_v37  ;;  %1603 = vrcp.f32 %v1054_v34 }
 0x2f2   : > { %v1592_v10 = vpop.eup %1591  ;;  %v1056_v36 = vpop.xlane.xlu1 %1055 }
 0x2f3   : > { %1162 = vst [vmem:[%s2156_s12 + $0x28] sm:$0xff] %v1130_v24  ;;  %v1135_v16 = vmul.f32 %v1592_v10, %v2065_v39  ;;  %1605 = vrcp.f32 %v1056_v36 }
 0x2f4   : > { %v1594_v11 = vpop.eup %1593  ;;  %v1066_v40 = vpop.xlane.xlu0 %1065 }
 0x2f5   : > { %1167 = vst [vmem:[%s2156_s12 + $0x50] sm:$0xff] %v1135_v16  ;;  %v1136_v35 = vmul.f32 %v1594_v11, %v2069_v41  ;;  %1607 = vrcp.f32 %v1066_v40 }
 0x2f6   : > { %v1596_v13 = vpop.eup %1595  ;;  %v1068_v6 = vpop.xlane.xlu1 %1067 }
 0x2f7   : > { %1168 = vst [vmem:[%s2156_s12 + $0x58] sm:$0xff] %v1136_v35  ;;  %v1133_v37 = vmul.f32 %v1596_v13, %v2073_v43  ;;  %1609 = vrcp.f32 %v1068_v6 }
 0x2f8   : > { %v1598_v20 = vpop.eup %1597  ;;  %v1062_v54 = vpop.xlane.xlu0 %1061 }
 0x2f9   : > { %1165 = vst [vmem:[%s2156_s12 + $0x40] sm:$0xff] %v1133_v37  ;;  %v1134_v39 = vmul.f32 %v1598_v20, %v2077_v45  ;;  %1611 = vrcp.f32 %v1062_v54 }
 0x2fa   : > { %v1600_v22 = vpop.eup %1599  ;;  %v1064_v58 = vpop.xlane.xlu1 %1063 }
 0x2fb   : > { %1166 = vst [vmem:[%s2156_s12 + $0x48] sm:$0xff] %v1134_v39  ;;  %v1139_v41 = vmul.f32 %v1600_v22, %v2081_v47  ;;  %1613 = vrcp.f32 %v1064_v58 }
 0x2fc   : > { %v1602_v25 = vpop.eup %1601  ;;  %v1074_v60 = vpop.xlane.xlu0 %1073 }
 0x2fd   : > { %1171 = vst [vmem:[%s2156_s12 + $0x70] sm:$0xff] %v1139_v41  ;;  %v1140_v43 = vmul.f32 %v1602_v25, %v2085_v49  ;;  %1615 = vrcp.f32 %v1074_v60 }
 0x2fe   : > { %v1604_v27 = vpop.eup %1603  ;;  %v1076_v62 = vpop.xlane.xlu1 %1075 }
 0x2ff   : > { %1172 = vst [vmem:[%s2156_s12 + $0x78] sm:$0xff] %v1140_v43  ;;  %v1137_v45 = vmul.f32 %v1604_v27, %v2089_v51  ;;  %1617 = vrcp.f32 %v1076_v62 }
 0x300   : > { %v1606_v0 = vpop.eup %1605  ;;  %v1070_v4 = vpop.xlane.xlu0 %1069 }
 0x301   : > { %1169 = vst [vmem:[%s2156_s12 + $0x60] sm:$0xff] %v1137_v45  ;;  %v1138_v47 = vmul.f32 %v1606_v0, %v2093_v53  ;;  %1619 = vrcp.f32 %v1070_v4 }
 0x302   : > { %v1608_v29 = vpop.eup %1607  ;;  %v1072_v5 = vpop.xlane.xlu1 %1071 }
 0x303   : > { %1170 = vst [vmem:[%s2156_s12 + $0x68] sm:$0xff] %v1138_v47  ;;  %v1143_v49 = vmul.f32 %v1608_v29, %v2097_v55  ;;  %1621 = vrcp.f32 %v1072_v5 }
 0x304   : > { %v1610_v31 = vpop.eup %1609  ;;  %v1082_v12 = vpop.xlane.xlu0 %1081 }
 0x305   : > { %1175 = vst [vmem:[%s2156_s12 + $0x90] sm:$0xff] %v1143_v49  ;;  %v1144_v51 = vmul.f32 %v1610_v31, %v2101_v57  ;;  %1623 = vrcp.f32 %v1082_v12 }
 0x306   : > { %v1612_v14 = vpop.eup %1611  ;;  %v1084_v46 = vpop.xlane.xlu1 %1083 }
 0x307   : > { %1176 = vst [vmem:[%s2156_s12 + $0x98] sm:$0xff] %v1144_v51  ;;  %v1141_v53 = vmul.f32 %v1612_v14, %v2105_v59  ;;  %1625 = vrcp.f32 %v1084_v46 }
 0x308   : > { %v1614_v33 = vpop.eup %1613  ;;  %v1078_v17 = vpop.xlane.xlu0 %1077 }
 0x309   : > { %1173 = vst [vmem:[%s2156_s12 + $0x80] sm:$0xff] %v1141_v53  ;;  %v1142_v55 = vmul.f32 %v1614_v33, %v2109_v61  ;;  %1627 = vrcp.f32 %v1078_v17 }
 0x30a   : > { %v1616_v19 = vpop.eup %1615  ;;  %v1080_v21 = vpop.xlane.xlu1 %1079 }
 0x30b   : > { %1174 = vst [vmem:[%s2156_s12 + $0x88] sm:$0xff] %v1142_v55  ;;  %v1147_v57 = vmul.f32 %v1616_v19, %v2113_v63  ;;  %1629 = vrcp.f32 %v1080_v21 }
 0x30c   : > { %v1618_v23 = vpop.eup %1617  ;;  %v1086_v56 = vpop.xlane.xlu0 %1085 }
 0x30d   : > { %1179 = vst [vmem:[%s2156_s12 + $0xb0] sm:$0xff] %v1147_v57  ;;  %v1148_v59 = vmul.f32 %v1618_v23, %v2116_v8  ;;  %1631 = vrcp.f32 %v1086_v56 }
 0x30e   : > { %v1620_v26 = vpop.eup %1619 }
 0x30f   : > { %1180 = vst [vmem:[%s2156_s12 + $0xb8] sm:$0xff] %v1148_v59  ;;  %v1145_v61 = vmul.f32 %v1620_v26, %v2121_v3 }
 0x310   : > { %v1622_v52 = vpop.eup %1621  ;;  %v1088_v28 = vpop.xlane.xlu1 %1087 }
 0x311   : > { %1177 = vst [vmem:[%s2156_s12 + $0xa0] sm:$0xff] %v1145_v61  ;;  %v1146_v30 = vmul.f32 %v1622_v52, %v2124_v38  ;;  %1633 = vrcp.f32 %v1088_v28  ;;  %v1090_v63 = vpop.xlane.xlu0 %1089 }
 0x312   : > { %v1624_v1 = vpop.eup %1623  ;;  %1635 = vrcp.f32 %v1090_v63 }
 0x313   : > { %1178 = vst [vmem:[%s2156_s12 + $0xa8] sm:$0xff] %v1146_v30  ;;  %v1151_v8 = vmul.f32 %v1624_v1, %v2128_v42 }
 0x314   : > { %v1626_v2 = vpop.eup %1625  ;;  %v1092_v32 = vpop.xlane.xlu1 %1091 }
 0x315   : > { %1183 = vst [vmem:[%s2156_s12 + $0xd0] sm:$0xff] %v1151_v8  ;;  %v1152_v3 = vmul.f32 %v1626_v2, %v2131_v7  ;;  %1637 = vrcp.f32 %v1092_v32 }
 0x316   : > { %v1628_v34 = vpop.eup %1627 }
 0x317   : > { %1184 = vst [vmem:[%s2156_s12 + $0xd8] sm:$0xff] %v1152_v3  ;;  %v1149_v38 = vmul.f32 %v1628_v34, %v2134_v44 }
 0x318   : > { %v1630_v24 = vpop.eup %1629 }
 0x319   : > { %1181 = vst [vmem:[%s2156_s12 + $0xc0] sm:$0xff] %v1149_v38  ;;  %v1150_v10 = vmul.f32 %v1630_v24, %v2137_v15 }
 0x31a   : > { %v1632_v36 = vpop.eup %1631 }
 0x31b   : > { %1182 = vst [vmem:[%s2156_s12 + $0xc8] sm:$0xff] %v1150_v10  ;;  %v1153_v42 = vmul.f32 %v1632_v36, %v2140_v9 }
 0x31d   : > { %1185 = vst [vmem:[%s2156_s12 + $0xe0] sm:$0xff] %v1153_v42 }
 0x31e   : > { %v1634_v7 = vpop.eup %1633 }
 0x31f   : > { %v1636_v16 = vpop.eup %1635  ;;  %v1154_v11 = vmul.f32 %v1634_v7, %v2143_v48 }
 0x320   : > { %v1155_v44 = vmul.f32 %v1636_v16, %v2145_v18 }
 0x321   : > { %1186 = vst [vmem:[%s2156_s12 + $0xe8] sm:$0xff] %v1154_v11 }
 0x322   : > { %v1638_v40 = vpop.eup %1637  ;;  %1187 = vst [vmem:[%s2156_s12 + $0xf0] sm:$0xff] %v1155_v44 }
 0x323   : > { %v1156_v15 = vmul.f32 %v1638_v40, %v2149_v50 }
 0x325   : > { %1188 = vst [vmem:[%s2156_s12 + $0xf8] sm:$0xff] %v1156_v15 }
 0x326   : > { %1652 = shalt.err (!%p1649_p3)
}
 0x327   : > { %s1653_s6 = scalar_lea.hbm %s2224_s17, 4096  ;;  %s1657_s9 = scalar_lea.hbm %s2277_s5, 8192 }
 0x328   : > { %p1654_p4 = scmp.ne.s32.totalorder %s2224_s17, %s1653_s6  ;;  %p1658_p9 = scmp.lt.s32.totalorder %s2224_s17, %s2277_s5 }
 0x329   : > { %p1659_p10 = scmp.lt.s32.totalorder %s1657_s9, %s1653_s6 }
 0x32a   : > { %p1655_p7 = pnand %p1654_p4, %p1772_p5 }
 0x32b   : > { %p1660_p11 = por %p1659_p10, %p1658_p9 }
 0x32c   : > { %p1656_p8 = pneg %p1655_p7 }
 0x32e   : > { %p1661_p12 = pnand %p1660_p11, %p1656_p8 }
 0x330   : > { %1664 = shalt.err (!%p1661_p12)
}
 0x331   : > { %s1702_s12 = smov 128   ;;  %s1703_s13 = smov 8  }
 0x332   : > { %1448 = dma.vmem_to_hbm [thread:$0]  (%p1772_p5), %s2226_s14, 4096, %s2224_s17, %s2232_s22, %s1702_s12, %s1702_s12, %s1703_s13  }
 0x333 PF: > { %p1454_p13 = scmp.ge.s32.totalorder %s1699_s21, 2  ;;  %s1218_s15 = sand.u32 1, %s1687_s18  }
 0x334   : > { %s1219_s16 = scalar_lea.sflag [#allocation3], %s1218_s15 }
 0x335   : > { %p1451_p0 = pnand %p1454_p13, %p1776_p6 }
 0x337   : > { %p1452_p1 = pneg %p1451_p0 }
 0x339   : > { %1682 = dma.done.wait (%p1452_p1), %s1219_s16, 4096  }
 0x33a   : > { %1684 = vsyncadd (%p1452_p1), %s1219_s16, 4294963200  ;;  %p15_p2 = scmp.ge.s32.totalorder %s1759_s24, 4   ;;  %s2280_s18 = smov %s1691_s19 }
 0x33b   : > { %s2281_s19 = smov %s1695_s20  ;;  %s2282_s20 = smov %s1770_s27 }
 0x33c   : > { %s2283_s21 = smov %s1759_s24  ;;  %17 = sbr.rel (!%p15_p2) target bundleno = 3 (0x3), region = 75 }
 0x341   :  { %1224 = vsyncpa [#allocation3], 1 }
 0x342   :  { %1226 = vsyncpa [#allocation3 + $0x1], 1 }

</bundles_post_ra>
